<compile_context>
chip_gen: v6e
topology: v6e:2x2x1
jax: 0.10.0
libtpu: 0.0.40
codegen_flags: <defaults>
</compile_context>

<pallas_src>
import functools

import jax
import jax.numpy as jnp
from jax import lax
from jax.experimental import pallas as pl
from jax.experimental.pallas import tpu as pltpu


def elu_p1(x):
    # F.elu(x, alpha=1.0) + 1.0.  exp argument is clamped so the unselected branch can
    # never produce inf.  (exp evaluates on all lanes; EUP slot is free here — intentional.)
    return jnp.where(x > 0, x + 1.0, jnp.exp(jnp.minimum(x, 0.0)))


def _linear_attn_kernel(x_ref, w_qkv_ref, b_qkv_ref, w_out_ref, o_ref,
                        *, bsz, num_head, dim_head, eps):
    """Single-step kernel over N = slen*bsz rows (s-major, b-minor order).

    x_ref      : (N, C)        f32
    w_qkv_ref  : (C, 3*H*D)    bf16  fused q|k|v projection (LN gamma folded in)
    b_qkv_ref  : (1, 3*H*D)    f32   beta @ W_qkv (LN beta folded in)
    w_out_ref  : (H*D, C)      bf16  out_linear.weight.T
    """
    x = x_ref[...]                                            # (N, C) f32
    N = x.shape[0]
    H, D = num_head, dim_head
    HD = H * D

    # ---- LayerNorm statistics only (affine is folded into w_qkv / b_qkv), f32 ----
    mean = jnp.mean(x, axis=-1, keepdims=True)
    xc = x - mean
    var = jnp.mean(xc * xc, axis=-1, keepdims=True)
    ln = xc * lax.rsqrt(var + eps)                            # (N, C) f32

    # ---- fused q|k|v projection: one (N,C)@(C,3HD) bf16 matmul, f32 accumulation ----
    qkv = jnp.dot(ln.astype(jnp.bfloat16), w_qkv_ref[...],
                  preferred_element_type=jnp.float32) + b_qkv_ref[...]   # (N, 3HD) f32

    qk = elu_p1(qkv[:, :2 * HD])                              # q|k blocks together (f32)
    q = qk[:, :HD]                                            # (N, HD), head-major lanes
    k = qk[:, HD:]                                            # (N, HD)
    v = qkv[:, 2 * HD:]                                       # (N, HD)

    # ---- fast_weight_sum (sum update rule, zero initial fast weights):
    #        out_t = q_t @ sum_{s<=t} k_s^T v_s  ==  (causal-masked q k^T) @ v
    # NOTE: batch is folded into the row axis by x_sbc.reshape(N, C) (s-major, b-minor),
    # so the mask below is "causal AND same batch element".  It is ONLY valid for that
    # flattening — keep the reshape and this mask coupled.
    row = lax.broadcasted_iota(jnp.int32, (N, N), 0)
    col = lax.broadcasted_iota(jnp.int32, (N, N), 1)
    mask = (row >= col) & ((row % bsz) == (col % bsz))

    attn_heads = []
    for h in range(H):                                        # static loop, H=2
        qh = q[:, h * D:(h + 1) * D].astype(jnp.bfloat16)
        kh = k[:, h * D:(h + 1) * D].astype(jnp.bfloat16)
        vh = v[:, h * D:(h + 1) * D].astype(jnp.bfloat16)
        s = jnp.dot(qh, kh.T, preferred_element_type=jnp.float32)    # (N, N)
        s = jnp.where(mask, s, 0.0)
        attn_heads.append(jnp.dot(s.astype(jnp.bfloat16), vh,
                                  preferred_element_type=jnp.float32))  # (N, D)
    attn = jnp.concatenate(attn_heads, axis=-1)               # (N, HD), head-major lanes

    # ---- out_linear as one (N,HD)@(HD,C) matmul: head reduction in the K dimension ----
    y = jnp.dot(attn.astype(jnp.bfloat16), w_out_ref[...],
                preferred_element_type=jnp.float32)           # (N, C)

    # TODO(synk): nn.Dropout omitted (eval-mode identity; dropout=0.0 here).
    # NOTE: C=32 (<128 lanes) -> masked partial store; unavoidable at this feature width.
    o_ref[...] = x + y


def linear_attention_layer(x_sbc, gamma, beta, w_slow, w_out, *, num_head, dim_head):
    """x_sbc: (slen, bsz, in_dim) float32. Returns the same shape."""
    S, B, C = x_sbc.shape
    H, D = num_head, dim_head
    N = S * B
    HD = H * D

    # Free view: collapse (slen, bsz) -> rows, s-major / b-minor.  The in-kernel
    # same-batch mask `(row % bsz) == (col % bsz)` depends on exactly this layout.
    x2 = x_sbc.reshape(N, C)

    # One-time weight preprocessing (tiny XLA ops, hoisted out of the kernel hot path).
    # slow_net.weight is (H*3*D, C) with row order [head, (q|k|v), d]; regroup its columns
    # (as a right-multiplied matrix) to [q(h,d), k(h,d), v(h,d)] so the kernel can take
    # static lane slices, and fold the LayerNorm affine into it.
    w3 = w_slow.reshape(H, 3, D, C)
    w_qkv = jnp.transpose(w3, (1, 0, 2, 3)).reshape(3 * HD, C).T      # (C, 3HD)
    w_qkv_scaled = (gamma[:, None] * w_qkv).astype(jnp.bfloat16)      # fold gamma
    b_qkv = (beta @ w_qkv).reshape(1, 3 * HD).astype(jnp.float32)     # fold beta

    # out_linear: y = attn @ w_out.T with w_out (C, HD)  ->  pass (HD, C) directly.
    w_out_t = jnp.transpose(w_out, (1, 0)).astype(jnp.bfloat16)       # (HD, C)

    kernel = functools.partial(_linear_attn_kernel, bsz=B, num_head=H, dim_head=D,
                               eps=1e-5)

    out = pl.pallas_call(
        kernel,
        out_shape=jax.ShapeDtypeStruct((N, C), jnp.float32),
        grid=(1,),                                            # tiny problem: one fat step
        in_specs=[
            pl.BlockSpec((N, C), lambda i: (0, 0)),           # x rows
            pl.BlockSpec((C, 3 * HD), lambda i: (0, 0)),      # fused qkv weights
            pl.BlockSpec((1, 3 * HD), lambda i: (0, 0)),      # folded LN-beta bias
            pl.BlockSpec((HD, C), lambda i: (0, 0)),          # out_linear weights (transposed)
        ],
        out_specs=pl.BlockSpec((N, C), lambda i: (0, 0)),
        compiler_params=pltpu.CompilerParams(dimension_semantics=("arbitrary",)),
    )(x2, w_qkv_scaled, b_qkv, w_out_t)

    return out.reshape(S, B, C)


def reference(x, gamma, beta, w_slow, w_out, num_head, dim_head,
              matmul_dtype=jnp.float32):
    """Pure-JAX reference mirroring the PyTorch forward.

    matmul_dtype=bfloat16 mirrors the kernel's bf16 MXU operands (f32 accumulation) for a
    tight comparison; matmul_dtype=float32 is the pure-f32 semantic reference.
    """
    S, B, C = x.shape
    H, D = num_head, dim_head
    md = matmul_dtype
    mean = x.mean(-1, keepdims=True)
    var = ((x - mean) ** 2).mean(-1, keepdims=True)
    ln = (x - mean) / jnp.sqrt(var + 1e-5) * gamma.reshape(1, 1, C) + beta.reshape(1, 1, C)
    qkv = jnp.einsum('sbc,fc->sbf', ln.astype(md), w_slow.astype(md),
                     preferred_element_type=jnp.float32)
    qkv = qkv.reshape(S, B, H, 3 * D)
    q, k, v = jnp.split(qkv, 3, axis=-1)                      # each (S, B, H, D)
    q = elu_p1(jnp.transpose(q, (1, 2, 0, 3)))                # (B, H, S, D)
    k = elu_p1(jnp.transpose(k, (1, 2, 0, 3)))
    v = jnp.transpose(v, (1, 2, 0, 3))
    s = jnp.einsum('bhtd,bhsd->bhts', q.astype(md), k.astype(md),
                   preferred_element_type=jnp.float32)
    causal = jnp.tril(jnp.ones((S, S), dtype=bool))
    s = jnp.where(causal[None, None], s, 0.0)
    o = jnp.einsum('bhts,bhsd->bhtd', s.astype(md), v.astype(md),
                   preferred_element_type=jnp.float32)
    o = jnp.transpose(o, (0, 2, 1, 3)).reshape(B, S, H * D)
    o = jnp.transpose(o, (1, 0, 2))                           # (S, B, H*D)
    y = jnp.einsum('sbe,ce->sbc', o.astype(md), w_out.astype(md),
                   preferred_element_type=jnp.float32)
    return x + y


if __name__ == "__main__":
    slen, bsz, in_dim = 8, 2, 32
    num_head, dim_head = 2, 8
    # dropout = 0.0 (identity)

    key = jax.random.PRNGKey(0)
    k_x, k_slow, k_out = jax.random.split(key, 3)

    x = jax.random.normal(k_x, (slen, bsz, in_dim), dtype=jnp.float32)

    # Parameters (deterministic, synthetic init)
    gamma = jnp.ones((in_dim,), dtype=jnp.float32)            # LayerNorm weight
    beta = jnp.zeros((in_dim,), dtype=jnp.float32)            # LayerNorm bias
    w_slow = 0.05 * jax.random.normal(k_slow, (num_head * 3 * dim_head, in_dim),
                                      dtype=jnp.float32)      # slow_net.weight (3HD, C)
    w_out = 0.05 * jax.random.normal(k_out, (in_dim, num_head * dim_head),
                                     dtype=jnp.float32)       # out_linear.weight (C, HD)

    out = linear_attention_layer(x, gamma, beta, w_slow, w_out,
                                 num_head=num_head, dim_head=dim_head)
    out = jax.block_until_ready(out)
    assert out.shape == (slen, bsz, in_dim)

    # Tight check vs. a reference using the same bf16 matmul operands (f32 accumulation).
    ref_bf16 = reference(x, gamma, beta, w_slow, w_out, num_head, dim_head,
                         matmul_dtype=jnp.bfloat16)
    assert jnp.allclose(out, ref_bf16, atol=2e-2, rtol=2e-2), \
        float(jnp.max(jnp.abs(out - ref_bf16)))

    # Loose sanity check vs. the pure-f32 reference (difference = bf16 operand rounding).
    ref_f32 = reference(x, gamma, beta, w_slow, w_out, num_head, dim_head,
                        matmul_dtype=jnp.float32)
    assert jnp.allclose(out, ref_f32, atol=2e-1, rtol=2e-1), \
        float(jnp.max(jnp.abs(out - ref_f32)))

    print("KERNEL_OK")
</pallas_src>

<mosaic_0001>
module attributes {stable_mosaic.version = 11 : i64} {
  func.func @_linear_attn_kernel(%arg0: i32, %arg1: memref<16x32xf32, #tpu.memory_space<vmem>>, %arg2: memref<32x48xbf16, #tpu.memory_space<vmem>>, %arg3: memref<1x48xf32, #tpu.memory_space<vmem>>, %arg4: memref<16x32xbf16, #tpu.memory_space<vmem>>, %arg5: memref<16x32xf32, #tpu.memory_space<vmem>>) attributes {dimension_semantics = [#tpu.dimension_semantics<arbitrary>], iteration_bounds = array<i64: 1>, scalar_prefetch = 0 : i64, scratch_operands = 0 : i64, tpu.core_type = #tpu.core_type<tc>, window_params = [{pipeline_mode = #tpu.pipeline_mode<synchronous>, transform_indices = @transform_0, window_bounds = array<i64: 16, 32>}, {pipeline_mode = #tpu.pipeline_mode<synchronous>, transform_indices = @transform_1, window_bounds = array<i64: 32, 48>}, {pipeline_mode = #tpu.pipeline_mode<synchronous>, transform_indices = @transform_2, window_bounds = array<i64: 1, 48>}, {pipeline_mode = #tpu.pipeline_mode<synchronous>, transform_indices = @transform_3, window_bounds = array<i64: 16, 32>}, {pipeline_mode = #tpu.pipeline_mode<synchronous>, transform_indices = @transform_4, window_bounds = array<i64: 16, 32>}]} {
    %c0 = arith.constant 0 : index
    %c0_0 = arith.constant 0 : index
    %0 = vector.load %arg1[%c0, %c0_0] : memref<16x32xf32, #tpu.memory_space<vmem>>, vector<16x32xf32>
    %cst = arith.constant dense<0.000000e+00> : vector<16xf32>
    %1 = vector.multi_reduction <add>, %0, %cst [1] : vector<16x32xf32> to vector<16xf32>
    %2 = vector.shape_cast %1 : vector<16xf32> to vector<16x1xf32>
    %cst_1 = arith.constant 3.200000e+01 : f32
    %3 = vector.broadcast %cst_1 : f32 to vector<16x1xf32>
    %4 = arith.divf %2, %3 : vector<16x1xf32>
    %5 = vector.broadcast %4 : vector<16x1xf32> to vector<16x32xf32>
    %6 = arith.subf %0, %5 : vector<16x32xf32>
    %7 = arith.mulf %6, %6 : vector<16x32xf32>
    %cst_2 = arith.constant dense<0.000000e+00> : vector<16xf32>
    %8 = vector.multi_reduction <add>, %7, %cst_2 [1] : vector<16x32xf32> to vector<16xf32>
    %9 = vector.shape_cast %8 : vector<16xf32> to vector<16x1xf32>
    %cst_3 = arith.constant 3.200000e+01 : f32
    %10 = vector.broadcast %cst_3 : f32 to vector<16x1xf32>
    %11 = arith.divf %9, %10 : vector<16x1xf32>
    %cst_4 = arith.constant 9.99999974E-6 : f32
    %12 = vector.broadcast %cst_4 : f32 to vector<16x1xf32>
    %13 = arith.addf %11, %12 : vector<16x1xf32>
    %14 = math.rsqrt %13 : vector<16x1xf32>
    %15 = vector.broadcast %14 : vector<16x1xf32> to vector<16x32xf32>
    %16 = arith.mulf %6, %15 : vector<16x32xf32>
    %17 = arith.truncf %16 : vector<16x32xf32> to vector<16x32xbf16>
    %c0_5 = arith.constant 0 : index
    %c0_6 = arith.constant 0 : index
    %18 = vector.load %arg2[%c0_5, %c0_6] : memref<32x48xbf16, #tpu.memory_space<vmem>>, vector<32x48xbf16>
    %cst_7 = arith.constant dense<0.000000e+00> : vector<16x48xf32>
    %19 = tpu.matmul %17, %18, %cst_7 {dimension_numbers = #tpu.dot_dimension_numbers<[1], [0], [0], [1], [0, 0, 1, 1], [], []>} : vector<16x32xbf16>, vector<32x48xbf16>, vector<16x48xf32> -> vector<16x48xf32>
    %c0_8 = arith.constant 0 : index
    %c0_9 = arith.constant 0 : index
    %20 = vector.load %arg3[%c0_8, %c0_9] : memref<1x48xf32, #tpu.memory_space<vmem>>, vector<1x48xf32>
    %21 = vector.broadcast %20 : vector<1x48xf32> to vector<16x48xf32>
    %22 = arith.addf %19, %21 : vector<16x48xf32>
    %23 = vector.extract_strided_slice %22 {offsets = [0, 0], sizes = [16, 32], strides = [1, 1]} : vector<16x48xf32> to vector<16x32xf32>
    %cst_10 = arith.constant 0.000000e+00 : f32
    %24 = vector.broadcast %cst_10 : f32 to vector<16x32xf32>
    %25 = arith.cmpf ogt, %23, %24 : vector<16x32xf32>
    %cst_11 = arith.constant 1.000000e+00 : f32
    %26 = vector.broadcast %cst_11 : f32 to vector<16x32xf32>
    %27 = arith.addf %23, %26 : vector<16x32xf32>
    %cst_12 = arith.constant 0.000000e+00 : f32
    %28 = vector.broadcast %cst_12 : f32 to vector<16x32xf32>
    %29 = arith.minimumf %23, %28 : vector<16x32xf32>
    %30 = math.exp %29 : vector<16x32xf32>
    %31 = arith.select %25, %27, %30 : vector<16x32xi1>, vector<16x32xf32>
    %32 = vector.extract_strided_slice %31 {offsets = [0, 0], sizes = [16, 16], strides = [1, 1]} : vector<16x32xf32> to vector<16x16xf32>
    %33 = vector.extract_strided_slice %31 {offsets = [0, 16], sizes = [16, 16], strides = [1, 1]} : vector<16x32xf32> to vector<16x16xf32>
    %34 = vector.extract_strided_slice %22 {offsets = [0, 32], sizes = [16, 16], strides = [1, 1]} : vector<16x48xf32> to vector<16x16xf32>
    %35 = tpu.iota {dimensions = array<i32: 0>} : vector<16x16xi32>
    %36 = tpu.iota {dimensions = array<i32: 1>} : vector<16x16xi32>
    %37 = arith.cmpi sge, %35, %36 : vector<16x16xi32>
    %c2_i32 = arith.constant 2 : i32
    %c0_i32 = arith.constant 0 : i32
    %38 = arith.cmpi eq, %c2_i32, %c0_i32 : i32
    %c1_i32 = arith.constant 1 : i32
    %39 = arith.select %38, %c1_i32, %c2_i32 : i32
    %40 = vector.broadcast %39 : i32 to vector<16x16xi32>
    %41 = arith.remsi %35, %40 : vector<16x16xi32>
    %c0_i32_13 = arith.constant 0 : i32
    %42 = vector.broadcast %c0_i32_13 : i32 to vector<16x16xi32>
    %43 = arith.cmpi ne, %41, %42 : vector<16x16xi32>
    %c0_i32_14 = arith.constant 0 : i32
    %44 = vector.broadcast %c0_i32_14 : i32 to vector<16x16xi32>
    %45 = arith.cmpi slt, %41, %44 : vector<16x16xi32>
    %c0_i32_15 = arith.constant 0 : i32
    %46 = arith.cmpi slt, %39, %c0_i32_15 : i32
    %47 = vector.broadcast %46 : i1 to vector<16x16xi1>
    %48 = vector.broadcast %47 : vector<16x16xi1> to vector<16x16xi1>
    %49 = arith.xori %45, %48 : vector<16x16xi1>
    %50 = arith.andi %49, %43 : vector<16x16xi1>
    %51 = vector.broadcast %39 : i32 to vector<16x16xi32>
    %52 = arith.addi %41, %51 : vector<16x16xi32>
    %53 = arith.select %50, %52, %41 : vector<16x16xi1>, vector<16x16xi32>
    %c2_i32_16 = arith.constant 2 : i32
    %c0_i32_17 = arith.constant 0 : i32
    %54 = arith.cmpi eq, %c2_i32_16, %c0_i32_17 : i32
    %c1_i32_18 = arith.constant 1 : i32
    %55 = arith.select %54, %c1_i32_18, %c2_i32_16 : i32
    %56 = vector.broadcast %55 : i32 to vector<16x16xi32>
    %57 = arith.remsi %36, %56 : vector<16x16xi32>
    %c0_i32_19 = arith.constant 0 : i32
    %58 = vector.broadcast %c0_i32_19 : i32 to vector<16x16xi32>
    %59 = arith.cmpi ne, %57, %58 : vector<16x16xi32>
    %c0_i32_20 = arith.constant 0 : i32
    %60 = vector.broadcast %c0_i32_20 : i32 to vector<16x16xi32>
    %61 = arith.cmpi slt, %57, %60 : vector<16x16xi32>
    %c0_i32_21 = arith.constant 0 : i32
    %62 = arith.cmpi slt, %55, %c0_i32_21 : i32
    %63 = vector.broadcast %62 : i1 to vector<16x16xi1>
    %64 = vector.broadcast %63 : vector<16x16xi1> to vector<16x16xi1>
    %65 = arith.xori %61, %64 : vector<16x16xi1>
    %66 = arith.andi %65, %59 : vector<16x16xi1>
    %67 = vector.broadcast %55 : i32 to vector<16x16xi32>
    %68 = arith.addi %57, %67 : vector<16x16xi32>
    %69 = arith.select %66, %68, %57 : vector<16x16xi1>, vector<16x16xi32>
    %70 = arith.cmpi eq, %53, %69 : vector<16x16xi32>
    %71 = arith.andi %37, %70 : vector<16x16xi1>
    %72 = vector.extract_strided_slice %32 {offsets = [0, 0], sizes = [16, 8], strides = [1, 1]} : vector<16x16xf32> to vector<16x8xf32>
    %73 = arith.truncf %72 : vector<16x8xf32> to vector<16x8xbf16>
    %74 = vector.extract_strided_slice %33 {offsets = [0, 0], sizes = [16, 8], strides = [1, 1]} : vector<16x16xf32> to vector<16x8xf32>
    %75 = arith.truncf %74 : vector<16x8xf32> to vector<16x8xbf16>
    %76 = vector.extract_strided_slice %34 {offsets = [0, 0], sizes = [16, 8], strides = [1, 1]} : vector<16x16xf32> to vector<16x8xf32>
    %77 = arith.truncf %76 : vector<16x8xf32> to vector<16x8xbf16>
    %78 = tpu.transpose %75, [1, 0] : vector<16x8xbf16> -> vector<8x16xbf16>
    %cst_22 = arith.constant dense<0.000000e+00> : vector<16x16xf32>
    %79 = tpu.matmul %73, %78, %cst_22 {dimension_numbers = #tpu.dot_dimension_numbers<[1], [0], [0], [1], [0, 0, 1, 1], [], []>} : vector<16x8xbf16>, vector<8x16xbf16>, vector<16x16xf32> -> vector<16x16xf32>
    %cst_23 = arith.constant 0.000000e+00 : f32
    %80 = vector.broadcast %cst_23 : f32 to vector<16x16xf32>
    %81 = arith.select %71, %79, %80 : vector<16x16xi1>, vector<16x16xf32>
    %82 = arith.truncf %81 : vector<16x16xf32> to vector<16x16xbf16>
    %cst_24 = arith.constant dense<0.000000e+00> : vector<16x8xf32>
    %83 = tpu.matmul %82, %77, %cst_24 {dimension_numbers = #tpu.dot_dimension_numbers<[1], [0], [0], [1], [0, 0, 1, 1], [], []>} : vector<16x16xbf16>, vector<16x8xbf16>, vector<16x8xf32> -> vector<16x8xf32>
    %84 = vector.extract_strided_slice %32 {offsets = [0, 8], sizes = [16, 8], strides = [1, 1]} : vector<16x16xf32> to vector<16x8xf32>
    %85 = arith.truncf %84 : vector<16x8xf32> to vector<16x8xbf16>
    %86 = vector.extract_strided_slice %33 {offsets = [0, 8], sizes = [16, 8], strides = [1, 1]} : vector<16x16xf32> to vector<16x8xf32>
    %87 = arith.truncf %86 : vector<16x8xf32> to vector<16x8xbf16>
    %88 = vector.extract_strided_slice %34 {offsets = [0, 8], sizes = [16, 8], strides = [1, 1]} : vector<16x16xf32> to vector<16x8xf32>
    %89 = arith.truncf %88 : vector<16x8xf32> to vector<16x8xbf16>
    %90 = tpu.transpose %87, [1, 0] : vector<16x8xbf16> -> vector<8x16xbf16>
    %cst_25 = arith.constant dense<0.000000e+00> : vector<16x16xf32>
    %91 = tpu.matmul %85, %90, %cst_25 {dimension_numbers = #tpu.dot_dimension_numbers<[1], [0], [0], [1], [0, 0, 1, 1], [], []>} : vector<16x8xbf16>, vector<8x16xbf16>, vector<16x16xf32> -> vector<16x16xf32>
    %cst_26 = arith.constant 0.000000e+00 : f32
    %92 = vector.broadcast %cst_26 : f32 to vector<16x16xf32>
    %93 = arith.select %71, %91, %92 : vector<16x16xi1>, vector<16x16xf32>
    %94 = arith.truncf %93 : vector<16x16xf32> to vector<16x16xbf16>
    %cst_27 = arith.constant dense<0.000000e+00> : vector<16x8xf32>
    %95 = tpu.matmul %94, %89, %cst_27 {dimension_numbers = #tpu.dot_dimension_numbers<[1], [0], [0], [1], [0, 0, 1, 1], [], []>} : vector<16x16xbf16>, vector<16x8xbf16>, vector<16x8xf32> -> vector<16x8xf32>
    %96 = tpu.concatenate %83, %95 in 1 : vector<16x8xf32>, vector<16x8xf32> -> vector<16x16xf32>
    %97 = arith.truncf %96 : vector<16x16xf32> to vector<16x16xbf16>
    %c0_28 = arith.constant 0 : index
    %c0_29 = arith.constant 0 : index
    %98 = vector.load %arg4[%c0_28, %c0_29] : memref<16x32xbf16, #tpu.memory_space<vmem>>, vector<16x32xbf16>
    %cst_30 = arith.constant dense<0.000000e+00> : vector<16x32xf32>
    %99 = tpu.matmul %97, %98, %cst_30 {dimension_numbers = #tpu.dot_dimension_numbers<[1], [0], [0], [1], [0, 0, 1, 1], [], []>} : vector<16x16xbf16>, vector<16x32xbf16>, vector<16x32xf32> -> vector<16x32xf32>
    %100 = arith.addf %0, %99 : vector<16x32xf32>
    %c0_31 = arith.constant 0 : index
    %c0_32 = arith.constant 0 : index
    %101 = vector.load %arg5[%c0_31, %c0_32] : memref<16x32xf32, #tpu.memory_space<vmem>>, vector<16x32xf32>
    tpu.vector_store %arg5[%c0_31, %c0_32], %100 {strides = array<i32>} : memref<16x32xf32, #tpu.memory_space<vmem>>, vector<16x32xf32>,
    return
  }
  func.func @transform_0(%arg0: i32) -> (i32, i32) {
    %c0_i32 = arith.constant 0 : i32
    %c0_i32_0 = arith.constant 0 : i32
    %c0_i32_1 = arith.constant 0 : i32
    return %c0_i32, %c0_i32_0 : i32, i32
  }
  func.func @transform_1(%arg0: i32) -> (i32, i32) {
    %c0_i32 = arith.constant 0 : i32
    %c0_i32_0 = arith.constant 0 : i32
    %c0_i32_1 = arith.constant 0 : i32
    return %c0_i32, %c0_i32_0 : i32, i32
  }
  func.func @transform_2(%arg0: i32) -> (i32, i32) {
    %c0_i32 = arith.constant 0 : i32
    %c0_i32_0 = arith.constant 0 : i32
    %c0_i32_1 = arith.constant 0 : i32
    return %c0_i32, %c0_i32_0 : i32, i32
  }
  func.func @transform_3(%arg0: i32) -> (i32, i32) {
    %c0_i32 = arith.constant 0 : i32
    %c0_i32_0 = arith.constant 0 : i32
    %c0_i32_1 = arith.constant 0 : i32
    return %c0_i32, %c0_i32_0 : i32, i32
  }
  func.func @transform_4(%arg0: i32) -> (i32, i32) {
    %c0_i32 = arith.constant 0 : i32
    %c0_i32_0 = arith.constant 0 : i32
    %c0_i32_1 = arith.constant 0 : i32
    return %c0_i32, %c0_i32_0 : i32, i32
  }
}

</mosaic_0001>

<bundles_post_ra>
// kernel: tpu_custom_call.1
= control target key start
LH: loop header
LB: loop body
LE: loop exit
PB: predicated region body
PF: predicated region fallthrough
CT: control target
= control target key end

     0   :  { %9 = vsyncpa [#allocation3], 0  ;;  %s809_s0 = inlined_call_operand.hbm [shape: f32[16,32], index: 0, kind: input, shape index: {}]   ;;  %s810_s1 = inlined_call_operand.hbm [shape: bf16[32,48], index: 1, kind: input, shape index: {}]   ;;  %s811_s2 = inlined_call_operand.vmem [shape: f32[1,48], index: 2, kind: input, shape index: {}]   ;;  %s812_s3 = inlined_call_operand.hbm [shape: bf16[16,32], index: 3, kind: input, shape index: {}]   ;;  %s813_s4 = inlined_call_operand.hbm [shape: f32[16,32], index: 4, kind: output, shape index: {}]  }
   0x1   :  { %10 = vsyncpa [#allocation6], 0 }
   0x2   :  { %11 = vsyncpa [#allocation4], 0  ;;  %s686_s15 = smov [#allocation5]  }
   0x3   :  { %s29_s16 = sshll.u32 %s686_s15, 4  ;;  %s30_s16 = int_to_ptr.vmem [resolvable:$true] %s29_s16 }
   0x4   :  { %s608_s17 = scalar_lea.vmem %s30_s16, 256  ;;  %p613_p1 = scmp.lt.s32.totalorder %s30_s16, %s30_s16 }
   0x5   :  { %p609_p0 = scmp.ne.s32.totalorder %s30_s16, %s608_s17  ;;  %p614_p2 = scmp.lt.s32.totalorder %s608_s17, %s608_s17 }
   0x7   :  { %p615_p3 = por %p614_p2, %p613_p1 }
   0x9   :  { %p616_p4 = pnand %p615_p3, %p609_p0 }
   0xb   :  { %619 = shalt.err (!%p616_p4)
}
   0xc   :  { %s687_s18 = smov 64   ;;  %s688_s19 = smov 4  }
   0xd   :  { %35 = dma.hbm_to_vmem [thread:$0]  %s810_s1, 256, %s30_s16, [#allocation6], %s687_s18, %s687_s18, %s688_s19  }
   0xe   :  { %s689_s22 = smov [#allocation2]  }
   0xf   :  { %s17_s23 = sshll.u32 %s689_s22, 4  ;;  %s18_s23 = int_to_ptr.vmem [resolvable:$true] %s17_s23 }
  0x10   :  { %s628_s24 = scalar_lea.vmem %s18_s23, 256  ;;  %p633_p6 = scmp.lt.s32.totalorder %s18_s23, %s18_s23 }
  0x11   :  { %p629_p5 = scmp.ne.s32.totalorder %s18_s23, %s628_s24  ;;  %p634_p7 = scmp.lt.s32.totalorder %s628_s24, %s628_s24 }
  0x13   :  { %p635_p8 = por %p634_p7, %p633_p6 }
  0x15   :  { %p636_p9 = pnand %p635_p8, %p629_p5 }
  0x17   :  { %639 = shalt.err (!%p636_p9)
}
  0x18   :  { %s690_s25 = smov 128   ;;  %s691_s26 = smov 8  }
  0x19   :  { %23 = dma.hbm_to_vmem [thread:$0]  %s809_s0, 256, %s18_s23, [#allocation3], %s690_s25, %s690_s25, %s691_s26  }
  0x1a   :  { %s692_s1 = smov [#allocation7]  }
  0x1b   :  { %s43_s29 = sshll.u32 %s692_s1, 4  ;;  %s44_s29 = int_to_ptr.vmem [resolvable:$true] %s43_s29 }
  0x1c   :  { %s648_s30 = scalar_lea.vmem %s44_s29, 128  ;;  %p653_p11 = scmp.lt.s32.totalorder %s44_s29, %s44_s29 }
  0x1d   :  { %p649_p10 = scmp.ne.s32.totalorder %s44_s29, %s648_s30  ;;  %p654_p12 = scmp.lt.s32.totalorder %s648_s30, %s648_s30 }
  0x1f   :  { %p655_p13 = por %p654_p12, %p653_p11 }
  0x21   :  { %p656_p0 = pnand %p655_p13, %p649_p10 }
  0x23   :  { %659 = shalt.err (!%p656_p0)
}
  0x24   :  { %49 = dma.hbm_to_vmem [thread:$0]  %s812_s3, 128, %s44_s29, [#allocation6], %s687_s18, %s687_s18, %s688_s19  }
  0x25   :  { %680 = dma.done.wait [#allocation3], 256  }
  0x26   :  { %681 = vsyncadd [#allocation3], 4294967040 }
  0x27   :  { %682 = dma.done.wait [#allocation6], 384  }
  0x28   :  { %683 = vsyncadd [#allocation6], 4294966912  ;;  %vm62_vm0 = vcmask 261120   ;;  %v738_v0 = vld [vmem:[#allocation2] sm:$0xff]  ;;  %v740_v1 = vld [vmem:[#allocation2 + $0x8] sm:$0xff]  ;;  %v693_v15 = vmov 0.0   ;;  %v170_v53 = vlaneseq }
  0x29   :  { %v63_v2 = vsel %vm62_vm0, %v738_v0, 0.0  ;;  %v66_v3 = vsel %vm62_vm0, %v740_v1, 0.0  ;;  %v589_v14 = vld [vmem:[#allocation5 + $0x8] sm:$0xff]   ;;  %531 = vmatprep.subr.bf16.mxu0 %v693_v15  ;;  %vm694_vm1 = vmmov 0   ;;  %v590_v16 = vld [vmem:[#allocation5] sm:$0xff]   ;;  %539 = vmatprep.subr.bf16.mxu1 %v693_v15  ;;  %s696_s7 = smov 112  }
  0x2a   :  { %64 = vadd.xlane.f32.xlu0 %v63_v2  ;;  %535 = vmatprep.mubr.msk.bf16.mxu0 %vm694_vm1, %v693_v15  ;;  %v508_v28 = vld [vmem:[%s811_s2] ss:$0 sm:$0xff]  ;;  %s695_s2 = smov 104   ;;  %s697_s8 = smov 120   ;;  %vm222_vm4 = vcmask 64512   ;;  %v171_v54 = vshrl.u32 %v170_v53, 7 }
  0x2b   :  { %532 = vmatpush3.bf16.msra.mxu0 %v589_v14  ;;  %541 = vmatprep.mubr.msk.bf16.mxu1 %vm694_vm1, %v693_v15  ;;  %s698_s9 = smov 88   ;;  %s699_s10 = smov 96   ;;  %v174_v55 = vand.u32 127, %v170_v53  ;;  %vm277_vm11 = vcmask 130048  }
  0x2c   :  { %533 = vmatprep.subr.bf16.mxu0 %v693_v15  ;;  %v172_v56 = vadd.s32 8, %v171_v54  ;;  %v181_v57 = vand.u32 1, %v171_v54  ;;  %s700_s11 = smov [#allocation8]  }
  0x2d   :  { %v205_v58 = vand.u32 1, %v174_v55  ;;  %vm175_vm5 = vcmp.ge.s32.totalorder %v171_v54, %v174_v55  ;;  %s495_s12 = sshll.u32 %s700_s11, 4  ;;  %s496_s12 = int_to_ptr.vmem [resolvable:$true] %s495_s12 }
  0x2e   :  { %67 = vadd.xlane.f32.xlu0 %v66_v3  ;;  %v188_v59 = vand.u32 1, %v172_v56  ;;  %vm176_vm7 = vcmp.ge.s32.totalorder %v172_v56, %v174_v55  ;;  %s660_s13 = scalar_lea.vmem %s496_s12, 256  ;;  %p665_p2 = scmp.lt.s32.totalorder %s496_s12, %s496_s12 }
  0x2f   :  { %534 = vmatpush3.bf16.msra.mxu0 %v590_v16  ;;  %vm213_vm6 = vcmp.eq.s32.totalorder %v181_v57, %v205_v58  ;;  %v591_v16 = vld [vmem:[#allocation7] sm:$0xff]   ;;  %p661_p1 = scmp.ne.s32.totalorder %s496_s12, %s660_s13  ;;  %p666_p3 = scmp.lt.s32.totalorder %s660_s13, %s660_s13 }
  0x30   :  { %545 = vmatprep.subr.bf16.mxu0 %v693_v15  ;;  %vm214_vm8 = vcmp.eq.s32.totalorder %v188_v59, %v205_v58  ;;  %vm775_vm9 = vmand %vm175_vm5, %vm213_vm6 }
  0x31   :  { %vm779_vm10 = vmand %vm176_vm7, %vm214_vm8  ;;  %p667_p4 = por %p666_p3, %p665_p2 }
  0x33   :  { %p668_p5 = pnand %p667_p4, %p661_p1 }
  0xb3   :  { %v65_v4 = vpop.xlane.xlu0 %64 }
  0xb4   :  { %v70_v5 = vmul.f32 0.03125, %v65_v4 }
  0xb6   :  { %v72_v6 = vsub.f32 %v738_v0, %v70_v5 }
  0xb7   :  { %v68_v7 = vpop.xlane.xlu0 %67 }
  0xb8   :  { %v71_v8 = vmul.f32 0.03125, %v68_v7  ;;  %v74_v9 = vmul.f32 %v72_v6, %v72_v6 }
  0xba   :  { %v73_v10 = vsub.f32 %v740_v1, %v71_v8  ;;  %v76_v11 = vsel %vm62_vm0, %v74_v9, 0.0 }
  0xbb   :  { %77 = vadd.xlane.f32.xlu1 %v76_v11 }
  0xbc   :  { %v75_v12 = vmul.f32 %v73_v10, %v73_v10 }
  0xbe   :  { %v79_v13 = vsel %vm62_vm0, %v75_v12, 0.0 }
  0xbf   :  { %80 = vadd.xlane.f32.xlu1 %v79_v13 }
 0x144   :  { %v78_v17 = vpop.xlane.xlu1 %77 }
 0x145   :  { %v82_v18 = vmul.f32 0.03125, %v78_v17 }
 0x147   :  { %v84_v19 = vadd.f32 1e-05, %v82_v18 }
 0x148   :  { %v81_v20 = vpop.xlane.xlu1 %80 }
 0x149   :  { %v83_v21 = vmul.f32 0.03125, %v81_v20  ;;  %592 = vrsqrt.f32 %v84_v19 }
 0x14b   :  { %v85_v22 = vadd.f32 1e-05, %v83_v21 }
 0x14d   :  { %594 = vrsqrt.f32 %v85_v22 }
 0x156   :  { %v593_v23 = vpop.eup %592 }
 0x157   :  { %v88_v25 = vmul.f32 %v593_v23, %v72_v6 }
 0x15a   :  { %v595_v24 = vpop.eup %594 }
 0x15b   :  { %v89_v26 = vmul.f32 %v595_v24, %v73_v10 }
 0x15d   :  { %v90_v27 = vpack.c.bf16 %v89_v26, %v88_v25 }
 0x15f   :  { %536 = vmatmul.mubr.msk.bf16.vlgmr.msra.gmra.mxu0 %vm62_vm0, %v90_v27 }
 0x160   :  { %547 = vmatprep.mubr.msk.bf16.mxu0 %vm694_vm1, %v693_v15 }
 0x21f   :  { %v151_v29 = vpop.f32.mrf.mxu0 }
 0x220   :  { %v152_v30 = vadd.f32 %v508_v28, %v151_v29 }
 0x221   :  { %v537_v31 = vpop.f32.mrf.mxu0 }
 0x222   :  { %v162_v32 = vmin.f32 %v152_v30, 0.0  ;;  %v160_v40 = vadd.f32 1.0, %v152_v30  ;;  %vm158_vm2 = vcmp.gt.f32.partialorder %v152_v30, 0.0 }
 0x223   :  { %v154_v33 = vpop.f32.mrf.mxu0 }
 0x224   :  { %v164_v34 = vmul.f32 1.442695, %v162_v32  ;;  %v155_v35 = vadd.f32 %v508_v28, %v154_v33 }
 0x225   :  { %v538_v36 = vpop.f32.mrf.mxu0 }
 0x226   :  { %v163_v37 = vmin.f32 %v155_v35, 0.0  ;;  %596 = vpow2.f32 %v164_v34  ;;  %v161_v41 = vadd.f32 1.0, %v155_v35  ;;  %vm159_vm3 = vcmp.gt.f32.partialorder %v155_v35, 0.0 }
 0x227   :  { %v218_v46 = vpack.c.bf16 %v155_v35, %v152_v30 }
 0x228   :  { %v166_v38 = vmul.f32 1.442695, %v163_v37 }
 0x22a   :  { %598 = vpow2.f32 %v166_v38 }
 0x233   :  { %v597_v39 = vpop.eup %596 }
 0x234   :  { %v168_v43 = vsel %vm158_vm2, %v160_v40, %v597_v39 }
 0x237   :  { %v599_v42 = vpop.eup %598 }
 0x238   :  { %v169_v44 = vsel %vm159_vm3, %v161_v41, %v599_v42 }
 0x239   :  { %v217_v45 = vpack.c.bf16 %v169_v44, %v168_v43 }
 0x23b   :  { %324 = vrot.lane.b32.xlu1 %v217_v45, %s695_s2  ;;  %220 = vrot.lane.b32.xlu0 %v217_v45, %s696_s7 }
 0x23f   :  { %322 = vrot.lane.b32.xlu1 %v217_v45, %s697_s8  ;;  %376 = vrot.lane.b32.xlu0 %v218_v46, %s698_s9 }
 0x243   :  { %274 = vrot.lane.b32.xlu1 %v218_v46, %s699_s10 }
 0x2ad   :  { %v325_v47 = vpop.permute.xlu1 %324  ;;  %v221_v48 = vpop.permute.xlu0 %220 }
 0x2ae   :  { %v227_v49 = vsel %vm222_vm4, %v221_v48, 0  ;;  %v330_v52 = vsel %vm222_vm4, %v325_v47, 0 }
 0x2af   :  { %540 = vmatpush3.bf16.xpose.msra.mxu1 %v227_v49 }
 0x2b0   :  { %551 = vmatprep.subr.bf16.mxu1 %v693_v15 }
 0x2b1   :  { %v323_v50 = vpop.permute.xlu1 %322  ;;  %v377_v7 = vpop.permute.xlu0 %376 }
 0x2b5   :  { %v275_v51 = vpop.permute.xlu1 %274 }
 0x2b6   :  { %542 = vmatmul.mubr.msk.bf16.vlgmr.msra.gmra.mxu1 %vm222_vm4, %v217_v45  ;;  %546 = vmatpush3.bf16.msra.mxu0 %v275_v51 }
 0x2b7   :  { %552 = vmatpush3.bf16.xpose.msra.mxu1 %v330_v52  ;;  %553 = vmatprep.mubr.msk.bf16.mxu1 %vm694_vm1, %v693_v15 }
 0x2b8   :  { %557 = vmatprep.subr.bf16.mxu0 %v693_v15  ;;  %563 = vmatprep.subr.bf16.mxu1 %v693_v15 }
 0x2be   :  { %554 = vmatmul.mubr.msk.bf16.vlgmr.msra.gmra.mxu1 %vm222_vm4, %v323_v50 }
 0x2bf   :  { %565 = vmatprep.mubr.msk.bf16.mxu1 %vm694_vm1, %v693_v15  ;;  %564 = vmatpush3.bf16.msra.mxu1 %v591_v16 }
 0x376   :  { %v263_v60 = vpop.f32.mrf.mxu1 }
 0x377   :  { %v270_v3 = vsel %vm775_vm9, %v263_v60, 0.0 }
 0x378   :  { %v543_v62 = vpop.f32.mrf.mxu1 }
 0x37a   :  { %v266_v2 = vpop.f32.mrf.mxu1 }
 0x37b   :  { %v271_v4 = vsel %vm779_vm10, %v266_v2, 0.0 }
 0x37c   :  { %v272_v5 = vpack.c.bf16 %v271_v4, %v270_v3  ;;  %v544_v6 = vpop.f32.mrf.mxu1 }
 0x37e   :  { %548 = vmatmul.mubr.msk.bf16.vlgmr.msra.gmra.mxu0 %vm277_vm11, %v272_v5  ;;  %v366_v8 = vpop.f32.mrf.mxu1 }
 0x37f   :  { %558 = vmatpush3.bf16.msra.mxu0 %v377_v7  ;;  %559 = vmatprep.mubr.msk.bf16.mxu0 %vm694_vm1, %v693_v15  ;;  %v373_v11 = vsel %vm775_vm9, %v366_v8, 0.0 }
 0x380   :  { %v555_v9 = vpop.f32.mrf.mxu1 }
 0x382   :  { %v369_v10 = vpop.f32.mrf.mxu1 }
 0x383   :  { %v374_v12 = vsel %vm779_vm10, %v369_v10, 0.0 }
 0x384   :  { %v375_v13 = vpack.c.bf16 %v374_v12, %v373_v11  ;;  %v556_v14 = vpop.f32.mrf.mxu1 }
 0x386   :  { %560 = vmatmul.mubr.msk.bf16.vlgmr.msra.gmra.mxu0 %vm277_vm11, %v375_v13 }
 0x43e   :  { %v315_v17 = vpop.f32.mrf.mxu0 }
 0x440   :  { %v549_v18 = vpop.f32.mrf.mxu0 }
 0x442   :  { %v318_v19 = vpop.f32.mrf.mxu0 }
 0x444   :  { %v550_v20 = vpop.f32.mrf.mxu0 }
 0x446   :  { %v416_v21 = vpop.f32.mrf.mxu0 }
 0x448   :  { %v561_v15 = vpop.f32.mrf.mxu0 }
 0x44a   :  { %v419_v22 = vpop.f32.mrf.mxu0 }
 0x44b   :  { %v584_v23 = vpack.i.bf16 %v419_v22, %v416_v21 }
 0x44c   :  { %v562_v24 = vpop.f32.mrf.mxu0 }
 0x44d   :  { %585 = vrot.lane.b32.xlu1 %v584_v23, %s691_s26 }
 0x4bf   :  { %v586_v25 = vpop.permute.xlu1 %585 }
 0x4c0   :  { %v588_v26 = vunpack.i.h.bf16 %v586_v25  ;;  %v587_v27 = vunpack.i.l.bf16 %v586_v25 }
 0x4c2   :  { %v432_v28 = vsel %vm222_vm4, %v318_v19, %v588_v26  ;;  %v431_v29 = vsel %vm222_vm4, %v315_v17, %v587_v27 }
 0x4c3   :  { %v433_v30 = vpack.c.bf16 %v432_v28, %v431_v29 }
 0x4c5   :  { %566 = vmatmul.mubr.msk.bf16.vlgmr.msra.gmra.mxu1 %vm277_vm11, %v433_v30 }
 0x585   :  { %v479_v31 = vpop.f32.mrf.mxu1 }
 0x586   :  { %v486_v32 = vadd.f32 %v479_v31, %v738_v0 }
 0x587   :  { %v567_v33 = vpop.f32.mrf.mxu1 }
 0x588   :  { %488 = vst.msk [vmem:[#allocation8] sm:$0xff] %vm62_vm0, %v486_v32 }
 0x589   :  { %v482_v34 = vpop.f32.mrf.mxu1 }
 0x58a   :  { %v487_v35 = vadd.f32 %v482_v34, %v740_v1 }
 0x58b   :  { %v568_v36 = vpop.f32.mrf.mxu1 }
 0x58c   :  { %489 = vst.msk [vmem:[#allocation8 + $0x8] sm:$0xff] %vm62_vm0, %v487_v35 }
 0x58d   :  { %671 = shalt.err (!%p668_p5)
}
 0x58e   :  { %501 = dma.vmem_to_hbm [thread:$0]  %s496_s12, 256, %s813_s4, [#allocation4], %s690_s25, %s690_s25, %s691_s26  }
 0x58f   :  { %684 = dma.done.wait [#allocation4], 256  }
 0x590   :  { %685 = vsyncadd [#allocation4], 4294967040 }
 0x591   :  { %505 = vsyncpa [#allocation3], 1 }
 0x592   :  { %506 = vsyncpa [#allocation6], 1 }
 0x593   :  { %507 = vsyncpa [#allocation4], 1 }

</bundles_post_ra>
